<compile_context>
chip_gen: v7x
topology: tpu7x:2x2x1
jax: 0.10.0
libtpu: 0.0.40
codegen_flags: <defaults>
</compile_context>

<pallas_src>
import functools

import jax
import jax.numpy as jnp
from jax import lax
from jax.experimental import pallas as pl
from jax.experimental.pallas import tpu as pltpu


def _triplet_loss_cl_kernel(q_ref, gq_ref, g_ref, o_ref, m_ref, l_ref, d_ref,
                            *, n_total, tn, tk, mask_cols, bf16_matmul):
    i = pl.program_id(0)   # query-tile index  (parallel)
    k = pl.program_id(1)   # gallery-tile index (arbitrary / reduction)

    q = q_ref[...]         # (TN, D) native dtype — fed straight to the MXU
    g = g_ref[...]         # (TK, D) native dtype

    @pl.when(k == 0)
    def _init():
        # Diagonal logit q_i . g_i via a cheap row-wise dot (f32 on the VPU).
        diag = jnp.sum(q.astype(jnp.float32) * gq_ref[...].astype(jnp.float32),
                       axis=1, keepdims=True)                    # (TN, 1)
        d_ref[...] = diag
        m_ref[...] = diag          # running max starts at the diagonal logit
        l_ref[...] = jnp.zeros_like(l_ref)

    # s[r, c] = q_r . g_c  -> (TN, TK); f32 accumulation on the MXU.
    if bf16_matmul:
        qm, gm = q.astype(jnp.bfloat16), g.astype(jnp.bfloat16)
    else:
        qm, gm = q, g
    s = lax.dot_general(
        qm, gm,
        dimension_numbers=(((1,), (1,)), ((), ())),
        preferred_element_type=jnp.float32,
    )

    if mask_cols:
        # Last gallery tile is padded; keep pad columns out of max/denominator.
        col = lax.broadcasted_iota(jnp.int32, s.shape, 1)
        s = jnp.where(k * tk + col < n_total, s, jnp.float32(-1e30))

    # Online (streaming) log-sum-exp over the gallery axis.
    m_prev = m_ref[...]                                          # (TN, 1)
    m_new = jnp.maximum(m_prev, jnp.max(s, axis=-1, keepdims=True))
    e = jnp.exp(s - m_new)                                       # (TN, TK)
    l_ref[...] = (l_ref[...] * jnp.exp(m_prev - m_new)
                  + jnp.sum(e, axis=-1, keepdims=True))
    m_ref[...] = m_new

    @pl.when(k == pl.num_programs(1) - 1)
    def _finalize():
        num = jnp.exp(d_ref[...] - m_ref[...])   # <= 1 since m was seeded with diag
        per_row = -jnp.log(num / l_ref[...] + jnp.float32(1e-05))   # (TN, 1)
        row = lax.broadcasted_iota(jnp.int32, per_row.shape, 0)
        valid = (i * tn + row) < n_total         # mask padded query rows
        o_ref[...] = jnp.where(valid, per_row, jnp.float32(0.0))


def triplet_loss_cl(q_features, g_features, *, bf16_matmul=False):
    """Pallas TPU implementation of triplet_loss_cl.forward.

    q_features: (N, D), g_features: (N, D). Returns a (1,) float32 array,
    matching the PyTorch module's 1-element output.
    """
    assert q_features.shape == g_features.shape and q_features.ndim == 2
    n, d = q_features.shape

    # Query-tile size: 128 on v5e (128-wide MXU, 16 MiB scoped VMEM), else 256.
    tn_cap = 256
    try:
        kind = jax.devices()[0].device_kind.lower()
        if "v5 lite" in kind or "v5e" in kind or "v5lite" in kind:
            tn_cap = 128
    except Exception:
        pass
    tn = n if n <= tn_cap else tn_cap
    tk = n if n <= 512 else 512
    nq = pl.cdiv(n, tn)
    nk = pl.cdiv(n, tk)
    mask_cols = (n % tk) != 0

    kernel = functools.partial(
        _triplet_loss_cl_kernel,
        n_total=n, tn=tn, tk=tk, mask_cols=mask_cols, bf16_matmul=bf16_matmul)

    # Scoped-VMEM budget from the actual buffers, with headroom.
    ib = q_features.dtype.itemsize
    est = (2 * 2 * tn * d * ib                     # q + gq (double-buffered)
           + (1 if nk == 1 else 2) * tk * d * ib   # gallery tiles
           + 2 * tn * 4 + 3 * tn * 4               # out block + f32 scratch
           + 6 * tn * tk * 4)                      # f32 s / e intermediates
    vmem_limit = int(min(max(est + (8 << 20), 32 << 20), 64 << 20))

    def build(single_buffer_g):
        if single_buffer_g:
            g_spec = pl.BlockSpec((tk, d), lambda i, k: (k, 0),
                                  pipeline_mode=pl.Buffered(1))
        else:
            g_spec = pl.BlockSpec((tk, d), lambda i, k: (k, 0))
        return pl.pallas_call(
            kernel,
            out_shape=jax.ShapeDtypeStruct((n, 1), jnp.float32),
            grid=(nq, nk),
            in_specs=[
                pl.BlockSpec((tn, d), lambda i, k: (i, 0)),  # q tile
                pl.BlockSpec((tn, d), lambda i, k: (i, 0)),  # g rows for diag
                g_spec,                                      # gallery k-tile
            ],
            out_specs=pl.BlockSpec((tn, 1), lambda i, k: (i, 0)),
            scratch_shapes=[pltpu.VMEM((tn, 1), jnp.float32),   # running max
                            pltpu.VMEM((tn, 1), jnp.float32),   # running denom
                            pltpu.VMEM((tn, 1), jnp.float32)],  # diag logit
            compiler_params=pltpu.CompilerParams(
                dimension_semantics=("parallel", "arbitrary"),
                vmem_limit_bytes=vmem_limit,
            ),
        )

    if nk == 1:
        # Gallery block index never changes across the grid -> single-buffer it
        # to halve its VMEM footprint; fall back to the default pipeline if the
        # installed JAX version rejects pipeline_mode.
        try:
            per_row = build(True)(q_features, g_features, g_features)
        except Exception:
            per_row = build(False)(q_features, g_features, g_features)
    else:
        per_row = build(False)(q_features, g_features, g_features)

    return (jnp.sum(per_row) / jnp.float32(n)).reshape(1)


def _reference(q_features, g_features):
    # Pure-JAX reference mirroring the PyTorch loop exactly.
    n = q_features.shape[0]
    loss = jnp.zeros((1,), dtype=jnp.float32)
    for i in range(n):
        ip = g_features @ q_features[i].reshape(-1, 1)
        ep = jnp.exp(ip)
        es = jnp.sum(ep)
        loss = loss + (-jnp.log(ep[i] / es + 1e-05))
    return loss / n


if __name__ == "__main__":
    key = jax.random.PRNGKey(0)
    kq, kg = jax.random.split(key)
    N, D = 8, 32  # small shapes: 8 features of dim 32
    # Modest magnitudes so exp() in the looped reference stays well-conditioned.
    q = jax.random.normal(kq, (N, D), dtype=jnp.float32) * 0.1
    g = jax.random.normal(kg, (N, D), dtype=jnp.float32) * 0.1

    out = triplet_loss_cl(q, g)
    jax.block_until_ready(out)

    ref = _reference(q, g)
    assert out.shape == (1,)
    assert jnp.allclose(out, ref.reshape(1), rtol=1e-5, atol=1e-5), (out, ref)
    print("KERNEL_OK")
</pallas_src>

<mosaic_0001>
module attributes {stable_mosaic.version = 11 : i64} {
  func.func @_triplet_loss_cl_kernel(%arg0: i32, %arg1: i32, %arg2: memref<8x32xf32, #tpu.memory_space<vmem>>, %arg3: memref<8x32xf32, #tpu.memory_space<vmem>>, %arg4: memref<8x32xf32, #tpu.memory_space<vmem>>, %arg5: memref<8x1xf32, #tpu.memory_space<vmem>>, %arg6: memref<8x1xf32, #tpu.memory_space<vmem>>, %arg7: memref<8x1xf32, #tpu.memory_space<vmem>>, %arg8: memref<8x1xf32, #tpu.memory_space<vmem>>) attributes {dimension_semantics = [#tpu.dimension_semantics<parallel>, #tpu.dimension_semantics<arbitrary>], iteration_bounds = array<i64: 1, 1>, scalar_prefetch = 0 : i64, scratch_operands = 3 : i64, tpu.core_type = #tpu.core_type<tc>, window_params = [{transform_indices = @transform_0, window_bounds = array<i64: 8, 32>}, {transform_indices = @transform_1, window_bounds = array<i64: 8, 32>}, {pipeline_mode = #tpu.pipeline_mode<synchronous>, transform_indices = @transform_2, window_bounds = array<i64: 8, 32>}, {transform_indices = @transform_3, window_bounds = array<i64: 8, 1>}]} {
    %c0 = arith.constant 0 : index
    %c0_0 = arith.constant 0 : index
    %0 = vector.load %arg2[%c0, %c0_0] : memref<8x32xf32, #tpu.memory_space<vmem>>, vector<8x32xf32>
    %c0_1 = arith.constant 0 : index
    %c0_2 = arith.constant 0 : index
    %1 = vector.load %arg4[%c0_1, %c0_2] : memref<8x32xf32, #tpu.memory_space<vmem>>, vector<8x32xf32>
    %c0_i32 = arith.constant 0 : i32
    %2 = arith.cmpi eq, %arg1, %c0_i32 : i32
    %3 = arith.extui %2 : i1 to i32
    %c0_i32_3 = arith.constant 0 : i32
    %4 = arith.cmpi ne, %3, %c0_i32_3 : i32
    scf.if %4 {
      %c0_16 = arith.constant 0 : index
      %c0_17 = arith.constant 0 : index
      %25 = vector.load %arg3[%c0_16, %c0_17] : memref<8x32xf32, #tpu.memory_space<vmem>>, vector<8x32xf32>
      %26 = arith.mulf %0, %25 : vector<8x32xf32>
      %cst_18 = arith.constant dense<0.000000e+00> : vector<8xf32>
      %27 = vector.multi_reduction <add>, %26, %cst_18 [1] : vector<8x32xf32> to vector<8xf32>
      %28 = vector.shape_cast %27 : vector<8xf32> to vector<8x1xf32>
      %c0_19 = arith.constant 0 : index
      %c0_20 = arith.constant 0 : index
      %29 = vector.load %arg8[%c0_19, %c0_20] : memref<8x1xf32, #tpu.memory_space<vmem>>, vector<8x1xf32>
      tpu.vector_store %arg8[%c0_19, %c0_20], %28 {strides = array<i32>} : memref<8x1xf32, #tpu.memory_space<vmem>>, vector<8x1xf32>,
      %c0_21 = arith.constant 0 : index
      %c0_22 = arith.constant 0 : index
      %30 = vector.load %arg6[%c0_21, %c0_22] : memref<8x1xf32, #tpu.memory_space<vmem>>, vector<8x1xf32>
      tpu.vector_store %arg6[%c0_21, %c0_22], %28 {strides = array<i32>} : memref<8x1xf32, #tpu.memory_space<vmem>>, vector<8x1xf32>,
      %cst_23 = arith.constant 0.000000e+00 : f32
      %31 = vector.broadcast %cst_23 : f32 to vector<8x1xf32>
      %c0_24 = arith.constant 0 : index
      %c0_25 = arith.constant 0 : index
      %32 = vector.load %arg7[%c0_24, %c0_25] : memref<8x1xf32, #tpu.memory_space<vmem>>, vector<8x1xf32>
      tpu.vector_store %arg7[%c0_24, %c0_25], %31 {strides = array<i32>} : memref<8x1xf32, #tpu.memory_space<vmem>>, vector<8x1xf32>,
    } else {
    }
    %cst = arith.constant dense<0.000000e+00> : vector<8x8xf32>
    %5 = tpu.matmul %0, %1, %cst {dimension_numbers = #tpu.dot_dimension_numbers<[1], [1], [0], [0], [0, 0, 1, 0], [], []>} : vector<8x32xf32>, vector<8x32xf32>, vector<8x8xf32> -> vector<8x8xf32>
    %c0_4 = arith.constant 0 : index
    %c0_5 = arith.constant 0 : index
    %6 = vector.load %arg6[%c0_4, %c0_5] : memref<8x1xf32, #tpu.memory_space<vmem>>, vector<8x1xf32>
    %cst_6 = arith.constant dense<0xFF800000> : vector<8xf32>
    %7 = vector.multi_reduction <maximumf>, %5, %cst_6 [1] : vector<8x8xf32> to vector<8xf32>
    %8 = vector.shape_cast %7 : vector<8xf32> to vector<8x1xf32>
    %9 = arith.maximumf %6, %8 : vector<8x1xf32>
    %10 = vector.broadcast %9 : vector<8x1xf32> to vector<8x8xf32>
    %11 = arith.subf %5, %10 : vector<8x8xf32>
    %12 = math.exp %11 : vector<8x8xf32>
    %c0_7 = arith.constant 0 : index
    %c0_8 = arith.constant 0 : index
    %13 = vector.load %arg7[%c0_7, %c0_8] : memref<8x1xf32, #tpu.memory_space<vmem>>, vector<8x1xf32>
    %14 = arith.subf %6, %9 : vector<8x1xf32>
    %15 = math.exp %14 : vector<8x1xf32>
    %16 = arith.mulf %13, %15 : vector<8x1xf32>
    %cst_9 = arith.constant dense<0.000000e+00> : vector<8xf32>
    %17 = vector.multi_reduction <add>, %12, %cst_9 [1] : vector<8x8xf32> to vector<8xf32>
    %18 = vector.shape_cast %17 : vector<8xf32> to vector<8x1xf32>
    %19 = arith.addf %16, %18 : vector<8x1xf32>
    %c0_10 = arith.constant 0 : index
    %c0_11 = arith.constant 0 : index
    %20 = vector.load %arg7[%c0_10, %c0_11] : memref<8x1xf32, #tpu.memory_space<vmem>>, vector<8x1xf32>
    tpu.vector_store %arg7[%c0_10, %c0_11], %19 {strides = array<i32>} : memref<8x1xf32, #tpu.memory_space<vmem>>, vector<8x1xf32>,
    %c0_12 = arith.constant 0 : index
    %c0_13 = arith.constant 0 : index
    %21 = vector.load %arg6[%c0_12, %c0_13] : memref<8x1xf32, #tpu.memory_space<vmem>>, vector<8x1xf32>
    tpu.vector_store %arg6[%c0_12, %c0_13], %9 {strides = array<i32>} : memref<8x1xf32, #tpu.memory_space<vmem>>, vector<8x1xf32>,
    %c0_i32_14 = arith.constant 0 : i32
    %22 = arith.cmpi eq, %arg1, %c0_i32_14 : i32
    %23 = arith.extui %22 : i1 to i32
    %c0_i32_15 = arith.constant 0 : i32
    %24 = arith.cmpi ne, %23, %c0_i32_15 : i32
    scf.if %24 {
      %c0_16 = arith.constant 0 : index
      %c0_17 = arith.constant 0 : index
      %25 = vector.load %arg8[%c0_16, %c0_17] : memref<8x1xf32, #tpu.memory_space<vmem>>, vector<8x1xf32>
      %c0_18 = arith.constant 0 : index
      %c0_19 = arith.constant 0 : index
      %26 = vector.load %arg6[%c0_18, %c0_19] : memref<8x1xf32, #tpu.memory_space<vmem>>, vector<8x1xf32>
      %27 = arith.subf %25, %26 : vector<8x1xf32>
      %28 = math.exp %27 : vector<8x1xf32>
      %c0_20 = arith.constant 0 : index
      %c0_21 = arith.constant 0 : index
      %29 = vector.load %arg7[%c0_20, %c0_21] : memref<8x1xf32, #tpu.memory_space<vmem>>, vector<8x1xf32>
      %30 = arith.divf %28, %29 : vector<8x1xf32>
      %cst_22 = arith.constant 9.99999974E-6 : f32
      %31 = vector.broadcast %cst_22 : f32 to vector<8x1xf32>
      %32 = arith.addf %30, %31 : vector<8x1xf32>
      %33 = math.log %32 : vector<8x1xf32>
      %cst_23 = arith.constant 0.000000e+00 : f32
      %34 = vector.broadcast %cst_23 : f32 to vector<8x1xf32>
      %35 = arith.subf %34, %33 : vector<8x1xf32>
      %36 = tpu.iota {dimensions = array<i32: 0>} : vector<8x1xi32>
      %c8_i32 = arith.constant 8 : i32
      %37 = arith.muli %arg0, %c8_i32 : i32
      %38 = vector.broadcast %37 : i32 to vector<8x1xi32>
      %39 = arith.addi %38, %36 : vector<8x1xi32>
      %c8_i32_24 = arith.constant 8 : i32
      %40 = vector.broadcast %c8_i32_24 : i32 to vector<8x1xi32>
      %41 = arith.cmpi slt, %39, %40 : vector<8x1xi32>
      %cst_25 = arith.constant 0.000000e+00 : f32
      %42 = vector.broadcast %cst_25 : f32 to vector<8x1xf32>
      %43 = arith.select %41, %35, %42 : vector<8x1xi1>, vector<8x1xf32>
      %c0_26 = arith.constant 0 : index
      %c0_27 = arith.constant 0 : index
      %44 = vector.load %arg5[%c0_26, %c0_27] : memref<8x1xf32, #tpu.memory_space<vmem>>, vector<8x1xf32>
      tpu.vector_store %arg5[%c0_26, %c0_27], %43 {strides = array<i32>} : memref<8x1xf32, #tpu.memory_space<vmem>>, vector<8x1xf32>,
    } else {
    }
    return
  }
  func.func @transform_0(%arg0: i32, %arg1: i32) -> (i32, i32) {
    %c0_i32 = arith.constant 0 : i32
    %c0_i32_0 = arith.constant 0 : i32
    return %arg0, %c0_i32 : i32, i32
  }
  func.func @transform_1(%arg0: i32, %arg1: i32) -> (i32, i32) {
    %c0_i32 = arith.constant 0 : i32
    %c0_i32_0 = arith.constant 0 : i32
    return %arg0, %c0_i32 : i32, i32
  }
  func.func @transform_2(%arg0: i32, %arg1: i32) -> (i32, i32) {
    %c0_i32 = arith.constant 0 : i32
    %c0_i32_0 = arith.constant 0 : i32
    return %arg1, %c0_i32 : i32, i32
  }
  func.func @transform_3(%arg0: i32, %arg1: i32) -> (i32, i32) {
    %c0_i32 = arith.constant 0 : i32
    %c0_i32_0 = arith.constant 0 : i32
    return %arg0, %c0_i32 : i32, i32
  }
}

module attributes {stable_mosaic.version = 11 : i64} {
  func.func @_triplet_loss_cl_kernel(%arg0: i32, %arg1: i32, %arg2: memref<8x32xf32, #tpu.memory_space<vmem>>, %arg3: memref<8x32xf32, #tpu.memory_space<vmem>>, %arg4: memref<8x32xf32, #tpu.memory_space<vmem>>, %arg5: memref<8x1xf32, #tpu.memory_space<vmem>>, %arg6: memref<8x1xf32, #tpu.memory_space<vmem>>, %arg7: memref<8x1xf32, #tpu.memory_space<vmem>>, %arg8: memref<8x1xf32, #tpu.memory_space<vmem>>) attributes {dimension_semantics = [#tpu.dimension_semantics<parallel>, #tpu.dimension_semantics<arbitrary>], iteration_bounds = array<i64: 1, 1>, scalar_prefetch = 0 : i64, scratch_operands = 3 : i64, tpu.core_type = #tpu.core_type<tc>, window_params = [{transform_indices = @transform_0, window_bounds = array<i64: 8, 32>}, {transform_indices = @transform_1, window_bounds = array<i64: 8, 32>}, {transform_indices = @transform_2, window_bounds = array<i64: 8, 32>}, {transform_indices = @transform_3, window_bounds = array<i64: 8, 1>}]} {
    %c0 = arith.constant 0 : index
    %c0_0 = arith.constant 0 : index
    %0 = vector.load %arg2[%c0, %c0_0] : memref<8x32xf32, #tpu.memory_space<vmem>>, vector<8x32xf32>
    %c0_1 = arith.constant 0 : index
    %c0_2 = arith.constant 0 : index
    %1 = vector.load %arg4[%c0_1, %c0_2] : memref<8x32xf32, #tpu.memory_space<vmem>>, vector<8x32xf32>
    %c0_i32 = arith.constant 0 : i32
    %2 = arith.cmpi eq, %arg1, %c0_i32 : i32
    %3 = arith.extui %2 : i1 to i32
    %c0_i32_3 = arith.constant 0 : i32
    %4 = arith.cmpi ne, %3, %c0_i32_3 : i32
    scf.if %4 {
      %c0_16 = arith.constant 0 : index
      %c0_17 = arith.constant 0 : index
      %25 = vector.load %arg3[%c0_16, %c0_17] : memref<8x32xf32, #tpu.memory_space<vmem>>, vector<8x32xf32>
      %26 = arith.mulf %0, %25 : vector<8x32xf32>
      %cst_18 = arith.constant dense<0.000000e+00> : vector<8xf32>
      %27 = vector.multi_reduction <add>, %26, %cst_18 [1] : vector<8x32xf32> to vector<8xf32>
      %28 = vector.shape_cast %27 : vector<8xf32> to vector<8x1xf32>
      %c0_19 = arith.constant 0 : index
      %c0_20 = arith.constant 0 : index
      %29 = vector.load %arg8[%c0_19, %c0_20] : memref<8x1xf32, #tpu.memory_space<vmem>>, vector<8x1xf32>
      tpu.vector_store %arg8[%c0_19, %c0_20], %28 {strides = array<i32>} : memref<8x1xf32, #tpu.memory_space<vmem>>, vector<8x1xf32>,
      %c0_21 = arith.constant 0 : index
      %c0_22 = arith.constant 0 : index
      %30 = vector.load %arg6[%c0_21, %c0_22] : memref<8x1xf32, #tpu.memory_space<vmem>>, vector<8x1xf32>
      tpu.vector_store %arg6[%c0_21, %c0_22], %28 {strides = array<i32>} : memref<8x1xf32, #tpu.memory_space<vmem>>, vector<8x1xf32>,
      %cst_23 = arith.constant 0.000000e+00 : f32
      %31 = vector.broadcast %cst_23 : f32 to vector<8x1xf32>
      %c0_24 = arith.constant 0 : index
      %c0_25 = arith.constant 0 : index
      %32 = vector.load %arg7[%c0_24, %c0_25] : memref<8x1xf32, #tpu.memory_space<vmem>>, vector<8x1xf32>
      tpu.vector_store %arg7[%c0_24, %c0_25], %31 {strides = array<i32>} : memref<8x1xf32, #tpu.memory_space<vmem>>, vector<8x1xf32>,
    } else {
    }
    %cst = arith.constant dense<0.000000e+00> : vector<8x8xf32>
    %5 = tpu.matmul %0, %1, %cst {dimension_numbers = #tpu.dot_dimension_numbers<[1], [1], [0], [0], [0, 0, 1, 0], [], []>} : vector<8x32xf32>, vector<8x32xf32>, vector<8x8xf32> -> vector<8x8xf32>
    %c0_4 = arith.constant 0 : index
    %c0_5 = arith.constant 0 : index
    %6 = vector.load %arg6[%c0_4, %c0_5] : memref<8x1xf32, #tpu.memory_space<vmem>>, vector<8x1xf32>
    %cst_6 = arith.constant dense<0xFF800000> : vector<8xf32>
    %7 = vector.multi_reduction <maximumf>, %5, %cst_6 [1] : vector<8x8xf32> to vector<8xf32>
    %8 = vector.shape_cast %7 : vector<8xf32> to vector<8x1xf32>
    %9 = arith.maximumf %6, %8 : vector<8x1xf32>
    %10 = vector.broadcast %9 : vector<8x1xf32> to vector<8x8xf32>
    %11 = arith.subf %5, %10 : vector<8x8xf32>
    %12 = math.exp %11 : vector<8x8xf32>
    %c0_7 = arith.constant 0 : index
    %c0_8 = arith.constant 0 : index
    %13 = vector.load %arg7[%c0_7, %c0_8] : memref<8x1xf32, #tpu.memory_space<vmem>>, vector<8x1xf32>
    %14 = arith.subf %6, %9 : vector<8x1xf32>
    %15 = math.exp %14 : vector<8x1xf32>
    %16 = arith.mulf %13, %15 : vector<8x1xf32>
    %cst_9 = arith.constant dense<0.000000e+00> : vector<8xf32>
    %17 = vector.multi_reduction <add>, %12, %cst_9 [1] : vector<8x8xf32> to vector<8xf32>
    %18 = vector.shape_cast %17 : vector<8xf32> to vector<8x1xf32>
    %19 = arith.addf %16, %18 : vector<8x1xf32>
    %c0_10 = arith.constant 0 : index
    %c0_11 = arith.constant 0 : index
    %20 = vector.load %arg7[%c0_10, %c0_11] : memref<8x1xf32, #tpu.memory_space<vmem>>, vector<8x1xf32>
    tpu.vector_store %arg7[%c0_10, %c0_11], %19 {strides = array<i32>} : memref<8x1xf32, #tpu.memory_space<vmem>>, vector<8x1xf32>,
    %c0_12 = arith.constant 0 : index
    %c0_13 = arith.constant 0 : index
    %21 = vector.load %arg6[%c0_12, %c0_13] : memref<8x1xf32, #tpu.memory_space<vmem>>, vector<8x1xf32>
    tpu.vector_store %arg6[%c0_12, %c0_13], %9 {strides = array<i32>} : memref<8x1xf32, #tpu.memory_space<vmem>>, vector<8x1xf32>,
    %c0_i32_14 = arith.constant 0 : i32
    %22 = arith.cmpi eq, %arg1, %c0_i32_14 : i32
    %23 = arith.extui %22 : i1 to i32
    %c0_i32_15 = arith.constant 0 : i32
    %24 = arith.cmpi ne, %23, %c0_i32_15 : i32
    scf.if %24 {
      %c0_16 = arith.constant 0 : index
      %c0_17 = arith.constant 0 : index
      %25 = vector.load %arg8[%c0_16, %c0_17] : memref<8x1xf32, #tpu.memory_space<vmem>>, vector<8x1xf32>
      %c0_18 = arith.constant 0 : index
      %c0_19 = arith.constant 0 : index
      %26 = vector.load %arg6[%c0_18, %c0_19] : memref<8x1xf32, #tpu.memory_space<vmem>>, vector<8x1xf32>
      %27 = arith.subf %25, %26 : vector<8x1xf32>
      %28 = math.exp %27 : vector<8x1xf32>
      %c0_20 = arith.constant 0 : index
      %c0_21 = arith.constant 0 : index
      %29 = vector.load %arg7[%c0_20, %c0_21] : memref<8x1xf32, #tpu.memory_space<vmem>>, vector<8x1xf32>
      %30 = arith.divf %28, %29 : vector<8x1xf32>
      %cst_22 = arith.constant 9.99999974E-6 : f32
      %31 = vector.broadcast %cst_22 : f32 to vector<8x1xf32>
      %32 = arith.addf %30, %31 : vector<8x1xf32>
      %33 = math.log %32 : vector<8x1xf32>
      %cst_23 = arith.constant 0.000000e+00 : f32
      %34 = vector.broadcast %cst_23 : f32 to vector<8x1xf32>
      %35 = arith.subf %34, %33 : vector<8x1xf32>
      %36 = tpu.iota {dimensions = array<i32: 0>} : vector<8x1xi32>
      %c8_i32 = arith.constant 8 : i32
      %37 = arith.muli %arg0, %c8_i32 : i32
      %38 = vector.broadcast %37 : i32 to vector<8x1xi32>
      %39 = arith.addi %38, %36 : vector<8x1xi32>
      %c8_i32_24 = arith.constant 8 : i32
      %40 = vector.broadcast %c8_i32_24 : i32 to vector<8x1xi32>
      %41 = arith.cmpi slt, %39, %40 : vector<8x1xi32>
      %cst_25 = arith.constant 0.000000e+00 : f32
      %42 = vector.broadcast %cst_25 : f32 to vector<8x1xf32>
      %43 = arith.select %41, %35, %42 : vector<8x1xi1>, vector<8x1xf32>
      %c0_26 = arith.constant 0 : index
      %c0_27 = arith.constant 0 : index
      %44 = vector.load %arg5[%c0_26, %c0_27] : memref<8x1xf32, #tpu.memory_space<vmem>>, vector<8x1xf32>
      tpu.vector_store %arg5[%c0_26, %c0_27], %43 {strides = array<i32>} : memref<8x1xf32, #tpu.memory_space<vmem>>, vector<8x1xf32>,
    } else {
    }
    return
  }
  func.func @transform_0(%arg0: i32, %arg1: i32) -> (i32, i32) {
    %c0_i32 = arith.constant 0 : i32
    %c0_i32_0 = arith.constant 0 : i32
    return %arg0, %c0_i32 : i32, i32
  }
  func.func @transform_1(%arg0: i32, %arg1: i32) -> (i32, i32) {
    %c0_i32 = arith.constant 0 : i32
    %c0_i32_0 = arith.constant 0 : i32
    return %arg0, %c0_i32 : i32, i32
  }
  func.func @transform_2(%arg0: i32, %arg1: i32) -> (i32, i32) {
    %c0_i32 = arith.constant 0 : i32
    %c0_i32_0 = arith.constant 0 : i32
    return %arg1, %c0_i32 : i32, i32
  }
  func.func @transform_3(%arg0: i32, %arg1: i32) -> (i32, i32) {
    %c0_i32 = arith.constant 0 : i32
    %c0_i32_0 = arith.constant 0 : i32
    return %arg0, %c0_i32 : i32, i32
  }
}

</mosaic_0001>

<bundles_post_ra>
// kernel: tpu_custom_call.1
= control target key start
LH: loop header
LB: loop body
LE: loop exit
PB: predicated region body
PF: predicated region fallthrough
CT: control target
= control target key end

     0   :  { %8 = vsyncpa [#allocation6], 0  ;;  %s367_s0 = inlined_call_operand.hbm [shape: f32[8,32], index: 0, kind: input, shape index: {}]   ;;  %s368_s1 = inlined_call_operand.hbm [shape: f32[8,32], index: 1, kind: input, shape index: {}]   ;;  %s369_s2 = inlined_call_operand.hbm [shape: f32[8,32], index: 2, kind: input, shape index: {}]   ;;  %s370_s3 = inlined_call_operand.vmem [shape: f32[8,1], index: 3, kind: output, shape index: {}]  }
   0x1   :  { %9 = vsyncpa [#allocation8], 0  ;;  %s294_s12 = smov [#allocation7]   ;;  %s295_s14 = smov [#allocation5]  }
   0x2   :  { %s26_s13 = sshll.u32 %s294_s12, 4  ;;  %s16_s15 = sshll.u32 %s295_s14, 4  ;;  %s27_s13 = int_to_ptr.vmem [resolvable:$true] %s26_s13  ;;  %s17_s15 = int_to_ptr.vmem [resolvable:$true] %s16_s15 }
   0x3   :  { %s224_s18 = scalar_lea.hbm %s368_s1, 128 }
   0x4   :  { %p225_p0 = scmp.ne.s32.totalorder %s368_s1, %s224_s18  ;;  %p228_p1 = scmp.lt.u32.totalorder %s224_s18, %s368_s1 }
   0x6   :  { %p230_p2 = pnand %p228_p1, %p225_p0 }
   0x8   :  { %233 = shalt.err (!%p230_p2)
}
   0x9   :  { %s234_s23 = scalar_lea.vmem %s27_s13, 128  ;;  %p239_p4 = scmp.lt.s32.totalorder %s27_s13, %s27_s13 }
   0xa   :  { %p235_p3 = scmp.ne.s32.totalorder %s27_s13, %s234_s23  ;;  %p240_p5 = scmp.lt.s32.totalorder %s234_s23, %s234_s23 }
   0xc   :  { %p241_p6 = por %p240_p5, %p239_p4 }
   0xe   :  { %p242_p7 = pnand %p241_p6, %p235_p3 }
  0x10   :  { %245 = shalt.err (!%p242_p7)
}
  0x11   :  { %29 = dma.hbm_to_vmem [thread:$0]  %s368_s1, 128, %s27_s13, [#allocation8]  }
  0x12   :  { %s246_s28 = scalar_lea.hbm %s367_s0, 128 }
  0x13   :  { %p247_p8 = scmp.ne.s32.totalorder %s367_s0, %s246_s28  ;;  %p250_p9 = scmp.lt.u32.totalorder %s246_s28, %s367_s0 }
  0x15   :  { %p252_p10 = pnand %p250_p9, %p247_p8 }
  0x17   :  { %255 = shalt.err (!%p252_p10)
}
  0x18   :  { %s256_s6 = scalar_lea.vmem %s17_s15, 128  ;;  %p261_p12 = scmp.lt.s32.totalorder %s17_s15, %s17_s15 }
  0x19   :  { %p257_p11 = scmp.ne.s32.totalorder %s17_s15, %s256_s6  ;;  %p262_p13 = scmp.lt.s32.totalorder %s256_s6, %s256_s6 }
  0x1b   :  { %p263_p0 = por %p262_p13, %p261_p12 }
  0x1d   :  { %p264_p1 = pnand %p263_p0, %p257_p11 }
  0x1f   :  { %267 = shalt.err (!%p264_p1)
}
  0x20   :  { %19 = dma.hbm_to_vmem [thread:$0]  %s367_s0, 128, %s17_s15, [#allocation6]  }
  0x21   :  { %s296_s8 = smov [#allocation9]   ;;  %s268_s12 = scalar_lea.hbm %s369_s2, 128 }
  0x22   :  { %s36_s9 = sshll.u32 %s296_s8, 4  ;;  %p269_p2 = scmp.ne.s32.totalorder %s369_s2, %s268_s12  ;;  %s37_s9 = int_to_ptr.vmem [resolvable:$true] %s36_s9 }
  0x23   :  { %p272_p3 = scmp.lt.u32.totalorder %s268_s12, %s369_s2 }
  0x25   :  { %p274_p4 = pnand %p272_p3, %p269_p2 }
  0x27   :  { %277 = shalt.err (!%p274_p4)
}
  0x28   :  { %s278_s18 = scalar_lea.vmem %s37_s9, 128  ;;  %p283_p6 = scmp.lt.s32.totalorder %s37_s9, %s37_s9 }
  0x29   :  { %p279_p5 = scmp.ne.s32.totalorder %s37_s9, %s278_s18  ;;  %p284_p7 = scmp.lt.s32.totalorder %s278_s18, %s278_s18 }
  0x2b   :  { %p285_p8 = por %p284_p7, %p283_p6 }
  0x2d   :  { %p286_p9 = pnand %p285_p8, %p279_p5 }
  0x2f   :  { %289 = shalt.err (!%p286_p9)
}
  0x30   :  { %39 = dma.hbm_to_vmem [thread:$0]  %s369_s2, 128, %s37_s9, [#allocation8]  }
  0x31   :  { %290 = dma.done.wait [#allocation6], 128  }
  0x32   :  { %291 = vsyncadd [#allocation6], 4294967168 }
  0x33   :  { %292 = dma.done.wait [#allocation8], 256  }
  0x34   :  { %293 = vsyncadd [#allocation8], 4294967040  ;;  %vm61_vm0 = vcmask 7168   ;;  %v297_v0 = vmov 0.0   ;;  %vm298_vm1 = vmmov 0   ;;  %vm57_vm2 = vcmask 261120  }
  0x35   :  { %64 = vst.msk [vmem:[#allocation3] sm:$0xff] %vm61_vm0, %v297_v0  ;;  %201 = vmatprep.subr.mxu0 %v297_v0  ;;  %203 = vmatprep.mubr.msk.f32.mxu0 %vm298_vm1, %v297_v0  ;;  %v50_v1 = vld [vmem:[#allocation9] sm:$0xff]  ;;  %v49_v2 = vld [vmem:[#allocation5] sm:$0xff]  ;;  %v55_v3 = vld [vmem:[#allocation7] sm:$0xff]  ;;  %vm143_vm3 = vcmask 64512   ;;  %v299_v10 = vmov 0  }
  0x36   :  { %202 = vmatpush3.xpose.msk.msra.mxu0 %vm57_vm2, %v50_v1  ;;  %v56_v4 = vmul.f32 %v55_v3, %v49_v2  ;;  %212 = vset.pattern.permute.xlu1 %v299_v10 }
  0x37   :  { %213 = vset.pattern.permute.xlu0 %v299_v10 }
  0x38   :  { %v58_v5 = vsel %vm57_vm2, %v56_v4, 0.0 }
  0x39   :  { %204 = vmatmul.mubr.msk.f32.vlgmr.msra.gmra.mrb[0].mxu0 %vm57_vm2, %v49_v2  ;;  %59 = vadd.xlane.f32.xlu0 %v58_v5 }
  0x3c   :  { %v156_v22 = vld [vmem:[#allocation3] sm:$0xff] }
  0xc6   :  { %v60_v6 = vpop.xlane.xlu0 %59 }
  0xc7   :  { %62 = vst.msk [vmem:[#allocation4] sm:$0xff] %vm61_vm0, %v60_v6  ;;  %63 = vst.msk [vmem:[#allocation2] sm:$0xff] %vm61_vm0, %v60_v6 }
  0xce   :  { %v142_v11 = vld [vmem:[#allocation2] sm:$0xff]  ;;  %v171_v26 = vld [vmem:[#allocation4] sm:$0xff] }
 0x10c   :  { %v138_v7 = vpop.f32.mrb[0].mxu0 }
 0x10d   :  { %v205_v8 = vpop.f32.mrb[1].mxu0  ;;  %v144_v9 = vsel %vm143_vm3, %v138_v7, -inf }
 0x10e   :  { %145 = vmax.xlane.f32.xlu0 %v144_v9 }
 0x19b   :  { %v146_v12 = vpop.xlane.xlu0 %145 }
 0x19c   :  { %v147_v13 = vmax.f32 %v142_v11, %v146_v12 }
 0x19e   :  { %v157_v14 = vsub.f32 %v142_v11, %v147_v13  ;;  %167 = vst.msk [vmem:[#allocation2] sm:$0xff] %vm61_vm0, %v147_v13  ;;  %150 = vperm.xlu1 %212, %v147_v13  }
 0x1a0   :  { %v158_v20 = vmul.f32 1.442695, %v157_v14 }
 0x1a5   :  { %v172_v23 = vld [vmem:[#allocation2] sm:$0xff] }
 0x1a6   :  { %v173_v28 = vsub.f32 %v171_v26, %v172_v23 }
 0x1a8   :  { %v174_v29 = vmul.f32 1.442695, %v173_v28 }
 0x21d   :  { %v151_v15 = vpop.permute.xlu1 %150 }
 0x21e   :  { %v153_v16 = vsub.f32 %v138_v7, %v151_v15 }
 0x220   :  { %v154_v17 = vmul.f32 1.442695, %v153_v16 }
 0x222   :  { %214 = vpow2.f32 %v154_v17 }
 0x223   :  { %216 = vpow2.f32 %v158_v20 }
 0x224   :  { %218 = vpow2.f32 %v174_v29 }
 0x22c   :  { %v215_v18 = vpop.eup %214 }
 0x22d   :  { %v161_v19 = vsel %vm143_vm3, %v215_v18, 0.0  ;;  %v217_v21 = vpop.eup %216 }
 0x22e   :  { %162 = vadd.xlane.f32.xlu1 %v161_v19  ;;  %v160_v24 = vmul.f32 %v217_v21, %v156_v22  ;;  %v219_v31 = vpop.eup %218 }
 0x2bb   :  { %v163_v25 = vpop.xlane.xlu1 %162 }
 0x2bc   :  { %v164_v27 = vadd.f32 %v163_v25, %v160_v24 }
 0x2be   :  { %166 = vst.msk [vmem:[#allocation3] sm:$0xff] %vm61_vm0, %v164_v27 }
 0x2c5   :  { %v176_v30 = vld [vmem:[#allocation3] sm:$0xff] }
 0x2c6   :  { %220 = vrcp.f32 %v176_v30 }
 0x2d0   :  { %v221_v32 = vpop.eup %220 }
 0x2d1   :  { %v178_v33 = vmul.f32 %v221_v32, %v219_v31 }
 0x2d3   :  { %v179_v34 = vadd.f32 1e-05, %v178_v33 }
 0x2d5   :  { %222 = vlog2.f32 %v179_v34 }
 0x2df   :  { %v223_v35 = vpop.eup %222 }
 0x2e0   :  { %v181_v36 = vmul.f32 0.6931472, %v223_v35 }
 0x2e2   :  { %v182_v37 = vsub.f32 0.0, %v181_v36 }
 0x2e4   :  { %190 = vst.msk [vmem:[%s370_s3] sm:$0xff] %vm61_vm0, %v182_v37 }
 0x2e5   :  { %195 = vsyncpa [#allocation6], 1 }
 0x2e6   :  { %196 = vsyncpa [#allocation8], 1 }

// kernel: tpu_custom_call.1
= control target key start
LH: loop header
LB: loop body
LE: loop exit
PB: predicated region body
PF: predicated region fallthrough
CT: control target
= control target key end

     0   :  { %8 = vsyncpa [#allocation6], 0  ;;  %s367_s0 = inlined_call_operand.hbm [shape: f32[8,32], index: 0, kind: input, shape index: {}]   ;;  %s368_s1 = inlined_call_operand.hbm [shape: f32[8,32], index: 1, kind: input, shape index: {}]   ;;  %s369_s2 = inlined_call_operand.hbm [shape: f32[8,32], index: 2, kind: input, shape index: {}]   ;;  %s370_s3 = inlined_call_operand.vmem [shape: f32[8,1], index: 3, kind: output, shape index: {}]  }
   0x1   :  { %9 = vsyncpa [#allocation8], 0  ;;  %s294_s12 = smov [#allocation7]   ;;  %s295_s14 = smov [#allocation5]  }
   0x2   :  { %s26_s13 = sshll.u32 %s294_s12, 4  ;;  %s16_s15 = sshll.u32 %s295_s14, 4  ;;  %s27_s13 = int_to_ptr.vmem [resolvable:$true] %s26_s13  ;;  %s17_s15 = int_to_ptr.vmem [resolvable:$true] %s16_s15 }
   0x3   :  { %s224_s18 = scalar_lea.hbm %s368_s1, 128 }
   0x4   :  { %p225_p0 = scmp.ne.s32.totalorder %s368_s1, %s224_s18  ;;  %p228_p1 = scmp.lt.u32.totalorder %s224_s18, %s368_s1 }
   0x6   :  { %p230_p2 = pnand %p228_p1, %p225_p0 }
   0x8   :  { %233 = shalt.err (!%p230_p2)
}
   0x9   :  { %s234_s23 = scalar_lea.vmem %s27_s13, 128  ;;  %p239_p4 = scmp.lt.s32.totalorder %s27_s13, %s27_s13 }
   0xa   :  { %p235_p3 = scmp.ne.s32.totalorder %s27_s13, %s234_s23  ;;  %p240_p5 = scmp.lt.s32.totalorder %s234_s23, %s234_s23 }
   0xc   :  { %p241_p6 = por %p240_p5, %p239_p4 }
   0xe   :  { %p242_p7 = pnand %p241_p6, %p235_p3 }
  0x10   :  { %245 = shalt.err (!%p242_p7)
}
  0x11   :  { %29 = dma.hbm_to_vmem [thread:$0]  %s368_s1, 128, %s27_s13, [#allocation8]  }
  0x12   :  { %s246_s28 = scalar_lea.hbm %s367_s0, 128 }
  0x13   :  { %p247_p8 = scmp.ne.s32.totalorder %s367_s0, %s246_s28  ;;  %p250_p9 = scmp.lt.u32.totalorder %s246_s28, %s367_s0 }
  0x15   :  { %p252_p10 = pnand %p250_p9, %p247_p8 }
  0x17   :  { %255 = shalt.err (!%p252_p10)
}
  0x18   :  { %s256_s6 = scalar_lea.vmem %s17_s15, 128  ;;  %p261_p12 = scmp.lt.s32.totalorder %s17_s15, %s17_s15 }
  0x19   :  { %p257_p11 = scmp.ne.s32.totalorder %s17_s15, %s256_s6  ;;  %p262_p13 = scmp.lt.s32.totalorder %s256_s6, %s256_s6 }
  0x1b   :  { %p263_p0 = por %p262_p13, %p261_p12 }
  0x1d   :  { %p264_p1 = pnand %p263_p0, %p257_p11 }
  0x1f   :  { %267 = shalt.err (!%p264_p1)
}
  0x20   :  { %19 = dma.hbm_to_vmem [thread:$0]  %s367_s0, 128, %s17_s15, [#allocation6]  }
  0x21   :  { %s296_s8 = smov [#allocation9]   ;;  %s268_s12 = scalar_lea.hbm %s369_s2, 128 }
  0x22   :  { %s36_s9 = sshll.u32 %s296_s8, 4  ;;  %p269_p2 = scmp.ne.s32.totalorder %s369_s2, %s268_s12  ;;  %s37_s9 = int_to_ptr.vmem [resolvable:$true] %s36_s9 }
  0x23   :  { %p272_p3 = scmp.lt.u32.totalorder %s268_s12, %s369_s2 }
  0x25   :  { %p274_p4 = pnand %p272_p3, %p269_p2 }
  0x27   :  { %277 = shalt.err (!%p274_p4)
}
  0x28   :  { %s278_s18 = scalar_lea.vmem %s37_s9, 128  ;;  %p283_p6 = scmp.lt.s32.totalorder %s37_s9, %s37_s9 }
  0x29   :  { %p279_p5 = scmp.ne.s32.totalorder %s37_s9, %s278_s18  ;;  %p284_p7 = scmp.lt.s32.totalorder %s278_s18, %s278_s18 }
  0x2b   :  { %p285_p8 = por %p284_p7, %p283_p6 }
  0x2d   :  { %p286_p9 = pnand %p285_p8, %p279_p5 }
  0x2f   :  { %289 = shalt.err (!%p286_p9)
}
  0x30   :  { %39 = dma.hbm_to_vmem [thread:$0]  %s369_s2, 128, %s37_s9, [#allocation8]  }
  0x31   :  { %290 = dma.done.wait [#allocation6], 128  }
  0x32   :  { %291 = vsyncadd [#allocation6], 4294967168 }
  0x33   :  { %292 = dma.done.wait [#allocation8], 256  }
  0x34   :  { %293 = vsyncadd [#allocation8], 4294967040  ;;  %vm61_vm0 = vcmask 7168   ;;  %v297_v0 = vmov 0.0   ;;  %vm298_vm1 = vmmov 0   ;;  %vm57_vm2 = vcmask 261120  }
  0x35   :  { %64 = vst.msk [vmem:[#allocation3] sm:$0xff] %vm61_vm0, %v297_v0  ;;  %201 = vmatprep.subr.mxu0 %v297_v0  ;;  %203 = vmatprep.mubr.msk.f32.mxu0 %vm298_vm1, %v297_v0  ;;  %v50_v1 = vld [vmem:[#allocation9] sm:$0xff]  ;;  %v49_v2 = vld [vmem:[#allocation5] sm:$0xff]  ;;  %v55_v3 = vld [vmem:[#allocation7] sm:$0xff]  ;;  %vm143_vm3 = vcmask 64512   ;;  %v299_v10 = vmov 0  }
  0x36   :  { %202 = vmatpush3.xpose.msk.msra.mxu0 %vm57_vm2, %v50_v1  ;;  %v56_v4 = vmul.f32 %v55_v3, %v49_v2  ;;  %212 = vset.pattern.permute.xlu1 %v299_v10 }
  0x37   :  { %213 = vset.pattern.permute.xlu0 %v299_v10 }
  0x38   :  { %v58_v5 = vsel %vm57_vm2, %v56_v4, 0.0 }
  0x39   :  { %204 = vmatmul.mubr.msk.f32.vlgmr.msra.gmra.mrb[0].mxu0 %vm57_vm2, %v49_v2  ;;  %59 = vadd.xlane.f32.xlu0 %v58_v5 }
  0x3c   :  { %v156_v22 = vld [vmem:[#allocation3] sm:$0xff] }
  0xc6   :  { %v60_v6 = vpop.xlane.xlu0 %59 }
  0xc7   :  { %62 = vst.msk [vmem:[#allocation4] sm:$0xff] %vm61_vm0, %v60_v6  ;;  %63 = vst.msk [vmem:[#allocation2] sm:$0xff] %vm61_vm0, %v60_v6 }
  0xce   :  { %v142_v11 = vld [vmem:[#allocation2] sm:$0xff]  ;;  %v171_v26 = vld [vmem:[#allocation4] sm:$0xff] }
 0x10c   :  { %v138_v7 = vpop.f32.mrb[0].mxu0 }
 0x10d   :  { %v205_v8 = vpop.f32.mrb[1].mxu0  ;;  %v144_v9 = vsel %vm143_vm3, %v138_v7, -inf }
 0x10e   :  { %145 = vmax.xlane.f32.xlu0 %v144_v9 }
 0x19b   :  { %v146_v12 = vpop.xlane.xlu0 %145 }
 0x19c   :  { %v147_v13 = vmax.f32 %v142_v11, %v146_v12 }
 0x19e   :  { %v157_v14 = vsub.f32 %v142_v11, %v147_v13  ;;  %167 = vst.msk [vmem:[#allocation2] sm:$0xff] %vm61_vm0, %v147_v13  ;;  %150 = vperm.xlu1 %212, %v147_v13  }
 0x1a0   :  { %v158_v20 = vmul.f32 1.442695, %v157_v14 }
 0x1a5   :  { %v172_v23 = vld [vmem:[#allocation2] sm:$0xff] }
 0x1a6   :  { %v173_v28 = vsub.f32 %v171_v26, %v172_v23 }
 0x1a8   :  { %v174_v29 = vmul.f32 1.442695, %v173_v28 }
 0x21d   :  { %v151_v15 = vpop.permute.xlu1 %150 }
 0x21e   :  { %v153_v16 = vsub.f32 %v138_v7, %v151_v15 }
 0x220   :  { %v154_v17 = vmul.f32 1.442695, %v153_v16 }
 0x222   :  { %214 = vpow2.f32 %v154_v17 }
 0x223   :  { %216 = vpow2.f32 %v158_v20 }
 0x224   :  { %218 = vpow2.f32 %v174_v29 }
 0x22c   :  { %v215_v18 = vpop.eup %214 }
 0x22d   :  { %v161_v19 = vsel %vm143_vm3, %v215_v18, 0.0  ;;  %v217_v21 = vpop.eup %216 }
 0x22e   :  { %162 = vadd.xlane.f32.xlu1 %v161_v19  ;;  %v160_v24 = vmul.f32 %v217_v21, %v156_v22  ;;  %v219_v31 = vpop.eup %218 }
 0x2bb   :  { %v163_v25 = vpop.xlane.xlu1 %162 }
 0x2bc   :  { %v164_v27 = vadd.f32 %v163_v25, %v160_v24 }
 0x2be   :  { %166 = vst.msk [vmem:[#allocation3] sm:$0xff] %vm61_vm0, %v164_v27 }
 0x2c5   :  { %v176_v30 = vld [vmem:[#allocation3] sm:$0xff] }
 0x2c6   :  { %220 = vrcp.f32 %v176_v30 }
 0x2d0   :  { %v221_v32 = vpop.eup %220 }
 0x2d1   :  { %v178_v33 = vmul.f32 %v221_v32, %v219_v31 }
 0x2d3   :  { %v179_v34 = vadd.f32 1e-05, %v178_v33 }
 0x2d5   :  { %222 = vlog2.f32 %v179_v34 }
 0x2df   :  { %v223_v35 = vpop.eup %222 }
 0x2e0   :  { %v181_v36 = vmul.f32 0.6931472, %v223_v35 }
 0x2e2   :  { %v182_v37 = vsub.f32 0.0, %v181_v36 }
 0x2e4   :  { %190 = vst.msk [vmem:[%s370_s3] sm:$0xff] %vm61_vm0, %v182_v37 }
 0x2e5   :  { %195 = vsyncpa [#allocation6], 1 }
 0x2e6   :  { %196 = vsyncpa [#allocation8], 1 }

</bundles_post_ra>
